<compile_context>
chip_gen: v7x
topology: tpu7x:2x2x1
jax: 0.10.0
libtpu: 0.0.40
codegen_flags: <defaults>
</compile_context>

<pallas_src>
import functools

import jax
import jax.numpy as jnp
from jax import lax
from jax.experimental import pallas as pl
from jax.experimental.pallas import tpu as pltpu

SOFT_PLUS_BETA = 20.0
EPSILON_MARGIN = 1e-16


def _lower_bounded(v):
    # softplus(v, beta=20) + eps  (numerically stable logaddexp form)
    return jnp.logaddexp(0.0, SOFT_PLUS_BETA * v) / SOFT_PLUS_BETA + EPSILON_MARGIN


def _cdiv(a, b):
    return -(-a // b)


def _round_up(v, m):
    return _cdiv(v, m) * m


def _pick_tile(dim, max_tile, granule):
    """Balanced tiling: fewest blocks with tile <= ~max_tile, tile rounded to granule.

    Returns (tile, n_blocks, padded_dim); padded_dim == dim whenever dim already
    splits evenly, so the epilogue slice can be skipped.
    """
    n_blocks = max(1, _cdiv(dim, max_tile))
    tile = _round_up(_cdiv(dim, n_blocks), granule)
    return tile, n_blocks, n_blocks * tile


def _sum_rbf_kernel(xa_ref, yc_ref, o_ref, *, use_bf16_exp):
    """One grid step -> one (tn, tm) output tile of one output dim.

    xa_ref : (1, tn, nx+3)    augmented query rows   [x, xq1, xq2, 1]
    yc_ref : (1, nx+3, 2*tm)  augmented support cols [RBF1 tile | RBF2 tile]
    o_ref  : (1, tn, tm)
    """
    # Full exponent (cross + row-quadratic + col-quadratic + log s^2) for both
    # RBF operands in a single MXU dot; K = nx+3 is tiny so MXU is far from the
    # bottleneck and HIGHEST precision keeps f32 parity with the reference.
    arg = jnp.dot(xa_ref[0], yc_ref[0],
                  preferred_element_type=jnp.float32,
                  precision=lax.Precision.HIGHEST)          # (tn, 2*tm)
    if use_bf16_exp:
        # v6e/v7x only: EUP is the saturated unit; bf16 exp ~doubles throughput.
        e = jnp.exp(arg.astype(jnp.bfloat16)).astype(jnp.float32)
    else:
        e = jnp.exp(arg)
    tm = o_ref.shape[2]
    o_ref[0] = (e[:, :tm] + e[:, tm:]).astype(o_ref.dtype)


def sum_kernel_forward(x, y, l1_raw, s1_raw, l2_raw, s2_raw,
                       tile_n=512, tile_m=1024,
                       use_bf16_exp=False, out_dtype=jnp.float32):
    """Sum(RBF, RBF).forward(x, y, diag=False) -> (ny, N, M)."""
    x = jnp.asarray(x, jnp.float32)
    y = jnp.asarray(y, jnp.float32)
    N, nx = x.shape
    M = y.shape[0]
    ny = l1_raw.shape[0]

    tn, n_blocks, n_pad = _pick_tile(N, tile_n, 8)
    tm, m_blocks, m_pad = _pick_tile(M, tile_m, 128)
    ka = nx + 3

    # ---- hyperparameter / quadratic-term prep (tiny, hoisted out of kernel) --
    def prep(l_raw, s_raw):
        l = _lower_bounded(jnp.asarray(l_raw, jnp.float32))   # (ny, nx)
        s = _lower_bounded(jnp.asarray(s_raw, jnp.float32))   # (ny, 1)
        return 1.0 / (l * l), 2.0 * jnp.log(s)                # inv_l^2, log s^2

    inv1, ls1 = prep(l1_raw, s1_raw)
    inv2, ls2 = prep(l2_raw, s2_raw)

    x_p = jnp.pad(x, ((0, n_pad - N), (0, 0)))                # (n_pad, nx)
    y_p = jnp.pad(y, ((0, m_pad - M), (0, 0)))                # (m_pad, nx)
    x_sq = x_p * x_p
    y_sq = y_p * y_p

    # Augmented LHS: columns [x, -0.5*||x/l1||^2, -0.5*||x/l2||^2, 1]
    xq1 = -0.5 * jnp.einsum('nd,jd->jn', x_sq, inv1)          # (ny, n_pad)
    xq2 = -0.5 * jnp.einsum('nd,jd->jn', x_sq, inv2)
    x_aug = jnp.concatenate(
        [jnp.broadcast_to(x_p[None], (ny, n_pad, nx)),
         xq1[:, :, None], xq2[:, :, None],
         jnp.ones((ny, n_pad, 1), jnp.float32)], axis=-1)     # (ny, n_pad, nx+3)

    # Augmented RHS per RBF: rows [y^T/l^2, sel1, sel2, log s^2 - 0.5*||y/l||^2]
    def make_y_aug(inv, log_s2, which):
        ys = y_p.T[None, :, :] * inv[:, :, None]                       # (ny, nx, m_pad)
        yh = log_s2 - 0.5 * jnp.einsum('md,jd->jm', y_sq, inv)         # (ny, m_pad)
        sel1 = jnp.full((ny, 1, m_pad), 1.0 if which == 0 else 0.0, jnp.float32)
        sel2 = jnp.full((ny, 1, m_pad), 1.0 if which == 1 else 0.0, jnp.float32)
        return jnp.concatenate([ys, sel1, sel2, yh[:, None, :]], axis=1)

    y1a = make_y_aug(inv1, ls1, 0)
    y2a = make_y_aug(inv2, ls2, 1)
    # Interleave per M-tile: block mi (width 2*tm) = [RBF1 tile mi | RBF2 tile mi],
    # so every grid step feeds exactly one dot that yields both exponents.
    ycat = jnp.stack([y1a.reshape(ny, ka, m_blocks, tm),
                      y2a.reshape(ny, ka, m_blocks, tm)], axis=3)
    ycat = ycat.reshape(ny, ka, 2 * m_pad)

    grid = (n_blocks, ny, m_blocks)   # largest axis outermost (megacore), M innermost

    cost = pl.CostEstimate(
        flops=int(ny * n_pad * m_pad * (4 * ka + 3)),
        transcendentals=int(2 * ny * n_pad * m_pad),
        bytes_accessed=int(jnp.dtype(out_dtype).itemsize * ny * n_pad * m_pad
                           + 4 * (ny * n_pad * ka + 2 * ny * ka * m_pad)),
    )

    out = pl.pallas_call(
        functools.partial(_sum_rbf_kernel, use_bf16_exp=use_bf16_exp),
        out_shape=jax.ShapeDtypeStruct((ny, n_pad, m_pad), out_dtype),
        grid=grid,
        in_specs=[
            pl.BlockSpec((1, tn, ka), lambda ni, i, mi: (i, ni, 0)),      # x_aug
            pl.BlockSpec((1, ka, 2 * tm), lambda ni, i, mi: (i, 0, mi)),  # ycat
        ],
        out_specs=pl.BlockSpec((1, tn, tm), lambda ni, i, mi: (i, ni, mi)),
        compiler_params=pltpu.CompilerParams(
            dimension_semantics=("parallel", "parallel", "parallel"),
            vmem_limit_bytes=32 * 1024 * 1024,
        ),
        cost_estimate=cost,
    )(x_aug, ycat)

    if n_pad == N and m_pad == M:
        return out                      # no epilogue slice/copy on aligned shapes
    return out[:, :N, :M]


def sum_kernel_reference(x, y, l1_raw, s1_raw, l2_raw, s2_raw):
    """Pure-JAX reference mirroring the torch forward (RBF + RBF)."""
    x = jnp.asarray(x, jnp.float32)
    y = jnp.asarray(y, jnp.float32)

    def rbf(l_raw, s_raw):
        l = _lower_bounded(jnp.asarray(l_raw, jnp.float32))     # (ny, nx)
        s = _lower_bounded(jnp.asarray(s_raw, jnp.float32))     # (ny, 1)
        xs = x[None, :, :] / l[:, None, :]                      # (ny, N, nx)
        ys = y[None, :, :] / l[:, None, :]                      # (ny, M, nx)
        sq = jnp.sum((xs[:, :, None, :] - ys[:, None, :, :]) ** 2, axis=-1)
        return (s[:, :, None] ** 2) * jnp.exp(-0.5 * sq)

    return rbf(l1_raw, s1_raw) + rbf(l2_raw, s2_raw)


def _run_case(key, N, M, nx, ny):
    k0, k1, k2, k3, k4, k5 = jax.random.split(key, 6)
    x = jax.random.normal(k0, (N, nx), jnp.float32)
    y = jax.random.normal(k1, (M, nx), jnp.float32)
    l1_raw = 1.0 + 0.3 * jax.random.normal(k2, (ny, nx), jnp.float32)
    s1_raw = 0.5 + 0.2 * jax.random.normal(k3, (ny, 1), jnp.float32)
    l2_raw = 0.8 + 0.3 * jax.random.normal(k4, (ny, nx), jnp.float32)
    s2_raw = 0.7 + 0.2 * jax.random.normal(k5, (ny, 1), jnp.float32)

    out = sum_kernel_forward(x, y, l1_raw, s1_raw, l2_raw, s2_raw)
    out = jax.block_until_ready(out)
    ref = sum_kernel_reference(x, y, l1_raw, s1_raw, l2_raw, s2_raw)
    if out.shape != (ny, N, M):
        raise AssertionError(f"wrong output shape {out.shape}")
    if not jnp.allclose(out, ref, rtol=1e-4, atol=1e-4):
        raise AssertionError("Pallas Sum kernel does not match reference")


if __name__ == "__main__":
    key = jax.random.PRNGKey(0)
    ka, kb, kc = jax.random.split(key, 3)
    # tiny shapes consistent with Kernel.forward: x (N, nx), y (M, nx)
    _run_case(ka, N=8, M=8, nx=3, ny=4)
    # (8,128)-aligned shapes exercise the no-padding / no-epilogue-slice path
    _run_case(kb, N=64, M=256, nx=3, ny=2)
    # non-aligned shapes exercise the balanced-tile padding + slicing path
    _run_case(kc, N=50, M=70, nx=3, ny=2)
    print("KERNEL_OK")
</pallas_src>

<mosaic_0001>
module attributes {stable_mosaic.version = 11 : i64} {
  func.func @_sum_rbf_kernel(%arg0: i32, %arg1: i32, %arg2: i32, %arg3: memref<1x8x6xf32, #tpu.memory_space<vmem>>, %arg4: memref<1x6x256xf32, #tpu.memory_space<vmem>>, %arg5: memref<1x8x128xf32, #tpu.memory_space<vmem>>) attributes {dimension_semantics = [#tpu.dimension_semantics<parallel>, #tpu.dimension_semantics<parallel>, #tpu.dimension_semantics<parallel>], iteration_bounds = array<i64: 1, 4, 1>, scalar_prefetch = 0 : i64, scratch_operands = 0 : i64, tpu.core_type = #tpu.core_type<tc>, window_params = [{transform_indices = @transform_0, window_bounds = array<i64: 1, 8, 6>}, {transform_indices = @transform_1, window_bounds = array<i64: 1, 6, 256>}, {transform_indices = @transform_2, window_bounds = array<i64: 1, 8, 128>}]} {
    %c0 = arith.constant 0 : index
    %c0_0 = arith.constant 0 : index
    %c0_1 = arith.constant 0 : index
    %0 = vector.load %arg3[%c0, %c0_0, %c0_1] : memref<1x8x6xf32, #tpu.memory_space<vmem>>, vector<1x8x6xf32>
    %1 = vector.shape_cast %0 : vector<1x8x6xf32> to vector<8x6xf32>
    %c0_2 = arith.constant 0 : index
    %c0_3 = arith.constant 0 : index
    %c0_4 = arith.constant 0 : index
    %2 = vector.load %arg4[%c0_2, %c0_3, %c0_4] : memref<1x6x256xf32, #tpu.memory_space<vmem>>, vector<1x6x256xf32>
    %3 = vector.shape_cast %2 : vector<1x6x256xf32> to vector<6x256xf32>
    %cst = arith.constant dense<0.000000e+00> : vector<8x256xf32>
    %4 = tpu.matmul %1, %3, %cst {dimension_numbers = #tpu.dot_dimension_numbers<[1], [0], [0], [1], [0, 0, 1, 1], [], []>, precision = #tpu.contract_precision<fp32>} : vector<8x6xf32>, vector<6x256xf32>, vector<8x256xf32> -> vector<8x256xf32>
    %5 = math.exp %4 : vector<8x256xf32>
    %6 = vector.extract_strided_slice %5 {offsets = [0, 0], sizes = [8, 128], strides = [1, 1]} : vector<8x256xf32> to vector<8x128xf32>
    %7 = vector.extract_strided_slice %5 {offsets = [0, 128], sizes = [8, 128], strides = [1, 1]} : vector<8x256xf32> to vector<8x128xf32>
    %8 = arith.addf %6, %7 : vector<8x128xf32>
    %c0_5 = arith.constant 0 : index
    %c0_6 = arith.constant 0 : index
    %c0_7 = arith.constant 0 : index
    %9 = vector.load %arg5[%c0_5, %c0_6, %c0_7] : memref<1x8x128xf32, #tpu.memory_space<vmem>>, vector<1x8x128xf32>
    %10 = vector.shape_cast %9 : vector<1x8x128xf32> to vector<8x128xf32>
    %11 = vector.shape_cast %8 : vector<8x128xf32> to vector<1x8x128xf32>
    tpu.vector_store %arg5[%c0_5, %c0_6, %c0_7], %11 {strides = array<i32>} : memref<1x8x128xf32, #tpu.memory_space<vmem>>, vector<1x8x128xf32>,
    return
  }
  func.func @transform_0(%arg0: i32, %arg1: i32, %arg2: i32) -> (i32, i32, i32) {
    %c0_i32 = arith.constant 0 : i32
    %c0_i32_0 = arith.constant 0 : i32
    return %arg1, %arg0, %c0_i32 : i32, i32, i32
  }
  func.func @transform_1(%arg0: i32, %arg1: i32, %arg2: i32) -> (i32, i32, i32) {
    %c0_i32 = arith.constant 0 : i32
    %c0_i32_0 = arith.constant 0 : i32
    return %arg1, %c0_i32, %arg2 : i32, i32, i32
  }
  func.func @transform_2(%arg0: i32, %arg1: i32, %arg2: i32) -> (i32, i32, i32) {
    %c0_i32 = arith.constant 0 : i32
    return %arg1, %arg0, %arg2 : i32, i32, i32
  }
}

</mosaic_0001>

<bundles_post_ra>
// kernel: tpu_custom_call.1
= control target key start
LH: loop header
LB: loop body
LE: loop exit
PB: predicated region body
PF: predicated region fallthrough
CT: control target
= control target key end

     0   :  { %7 = vsyncpa [#allocation3], 0  ;;  %s1099_s0 = inlined_call_operand.vmem [shape: f32[4,8,6], index: 0, kind: input, shape index: {}]   ;;  %s1100_s1 = inlined_call_operand.vmem [shape: f32[4,6,256], index: 1, kind: input, shape index: {}]   ;;  %s1101_s2 = inlined_call_operand.hbm [shape: f32[4,8,128], index: 2, kind: output, shape index: {}]  }
   0x1   :  { %9 = vsyncpa [#allocation3 + $0x1], 0  ;;  %s984_s9 = smov 0   ;;  %s986_s10 = smov 0  }
   0x2   :  { %s988_s11 = smov 0   ;;  %s990_s12 = smov 0  }
   0x3   :  { %s992_s13 = smov 0   ;;  %s994_s14 = smov 0  }
   0x4 LB: > { %s803_s15 = sadd.s32 4294967295, %s965_s14   ;;  %s804_s16 = sadd.s32 4294967294, %s965_s14   ;;  %s965_s14 = sphi %s994_s14, %s15_s14   ;;  %s961_s13 = sphi %s992_s13, %s1108_s13   ;;  %s957_s12 = sphi %s990_s12, %s1107_s12   ;;  %s953_s11 = sphi %s988_s11, %s1106_s11   ;;  %s949_s10 = sphi %s986_s10, %s1105_s10   ;;  %s945_s9 = sphi %s984_s9, %s1104_s9  }
   0x5   : > { %s30_s17 = sadd.s32 1, %s961_s13  ;;  %s101_s18 = sadd.s32 1, %s953_s11 }
   0x6   : > { %p32_p0 = scmp.ge.s32.totalorder %s30_s17, 4  ;;  %p111_p1 = scmp.ne.s32.totalorder %s953_s11, %s949_s10 }
   0x7   : > { %p112_p2 = scmp.eq.s32.totalorder %s803_s15, 3  ;;  %p117_p3 = scmp.ne.s32.totalorder %s949_s10, %s945_s9 }
   0x8   : > { %s1110_s17 = smov (%p32_p0, %s30_s17), 0  ;;  %p118_p5 = scmp.eq.s32.totalorder %s804_s16, 3 }
   0x9   : > { %p1024_p4 = por %p112_p2, %p111_p1  ;;  %s94_s20 = ssub.s32 %s961_s13, %s1110_s17 }
   0xa   : > { %p807_p6 = scmp.ge.s32.totalorder %s965_s14, 1  ;;  %p99_p7 = scmp.eq.s32.totalorder %s94_s20, 0 }
   0xb   : > { %p1031_p8 = por %p118_p5, %p117_p3  ;;  %p159_p9 = scmp.lt.s32.totalorder %s965_s14, 5 }
   0xc   : > { %s1037_s22 = scalar_select %p99_p7, %s953_s11, %s101_s18  }
   0xd   : > { %p160_p10 = pnand %p807_p6, %p159_p9 }
   0xe   : > { %p192_p11 = scmp.lt.s32.totalorder (!%p160_p10), %s957_s12, 3  ;;  %v967_v0 = vmov (!%p160_p10), 0.0   ;;  %vm216_vm0 = vcmask (!%p160_p10), 1045504   ;;  %vm212_vm1 = vcmask (!%p160_p10), 48128   ;;  %s189_s4 = sand.u32 (!%p160_p10), 1, %s949_s10  }
   0xf   : > { %163 = sbr.rel (%p160_p10) target bundleno = 299 (0x12b), region = 28  ;;  %526 = vmatprep.mubr.f32.mxu0 (!%p160_p10), %v967_v0  ;;  %289 = vmatprep.mubr.f32.mxu1 (!%p160_p10), %v967_v0  ;;  %s808_s5 = sshll.u32 (!%p160_p10), %s189_s4, 3 }
  0x10   : > { %s813_s6 = sshll.u32 (!%p160_p10), %s957_s12, 7  ;;  %s191_s7 = scalar_lea.vmem (!%p160_p10), [#allocation2], %s808_s5 }
  0x11   : > { %s710_s8 = sshll.u32 (!%p160_p10), %s191_s7, 4  ;;  %s1052_s18 = scalar_lea.hbm (!%p160_p10), %s1101_s2, %s813_s6  ;;  %s1054_s8 = int_to_ptr.vmem [resolvable:$true] %s710_s8 }
  0x12   : > { %s695_s20 = scalar_lea.sflag (!%p160_p10), [#allocation3], %s189_s4 }
  0x16   : > { %s193_s23 = scalar_select %p192_p11, %s957_s12, 3 }
  0x17   : > { %s968_s12 = smov [#allocation2]  }
  0x18   : > { %s816_s24 = sshll.u32 %s193_s23, 4  ;;  %s809_s25 = sshll.u32 %s193_s23, 3 }
  0x19   : > { %s207_s28 = scalar_lea.vmem %s1100_s1, %s816_s24  ;;  %s198_s3 = scalar_lea.vmem %s1099_s0, %s809_s25 }
  0x1a   : > { %v211_v1 = vld [vmem:[%s207_s28 + $0x8] sm:$0x3f]  ;;  %v210_v2 = vld [vmem:[%s207_s28] sm:$0x3f]  ;;  %s887_s23 = scalar_lea.vmem %s1054_s8, 128  ;;  %s891_s24 = sshll.u32 %s968_s12, 4  ;;  %s892_s24 = int_to_ptr.vmem [resolvable:$false] %s891_s24 }
  0x1b   : > { %v209_v3 = vld [vmem:[%s198_s3] sm:$0xff]  ;;  %v221_v4 = vsel %vm216_vm0, %v211_v1, 0  ;;  %v218_v5 = vsel %vm216_vm0, %v210_v2, 0  ;;  %p888_p12 = scmp.ne.s32.totalorder %s1054_s8, %s887_s23  ;;  %s893_s25 = scalar_lea.vmem %s892_s24, 256 }
  0x1c   : > { %v214_v6 = vsel %vm212_vm1, %v209_v3, 0  ;;  %v223_v7 = vand.u32 4294901760, %v221_v4  ;;  %v225_v8 = vand.u32 4294901760, %v218_v5  ;;  %p894_p1 = scmp.lt.s32.totalorder %s1054_s8, %s892_s24  ;;  %p895_p2 = scmp.lt.s32.totalorder %s893_s25, %s887_s23 }
  0x1d   : > { %v290_v9 = vand.u32 4294901760, %v214_v6  ;;  %p889_p13 = pnand %p888_p12, %p1024_p4 }
  0x1e   : > { %461 = vmatprep.subr.mxu0 %v223_v7  ;;  %v308_v10 = vsub.f32 %v218_v5, %v225_v8  ;;  %224 = vmatprep.subr.mxu1 %v223_v7  ;;  %v302_v12 = vsub.f32 %v221_v4, %v223_v7  ;;  %p896_p3 = por %p895_p2, %p894_p1 }
  0x1f   : > { %v291_v11 = vsub.f32 %v214_v6, %v290_v9  ;;  %463 = vmatpush1.msra.mxu0 %v225_v8  ;;  %226 = vmatpush1.msra.mxu1 %v225_v8  ;;  %p890_p0 = pneg %p889_p13 }
  0x20   : > { %v303_v14 = vand.u32 4294901760, %v302_v12  ;;  %v309_v15 = vand.u32 4294901760, %v308_v10 }
  0x21   : > { %v292_v13 = vand.u32 4294901760, %v291_v11  ;;  %p897_p5 = pnand %p896_p3, %p890_p0 }
  0x22   : > { %v304_v17 = vsub.f32 %v302_v12, %v303_v14  ;;  %539 = vmatprep.subr.mxu0 %v303_v14  ;;  %v310_v18 = vsub.f32 %v308_v10, %v309_v15 }
  0x23   : > { %530 = vmatmul.mubr.f32.vlgmr.msra.gmra.mrb[0].mxu0 %v292_v13  ;;  %v293_v16 = vsub.f32 %v291_v11, %v292_v13 }
  0x24   : > { %543 = vmatpush1.msra.mxu0 %v309_v15  ;;  %606 = vmatprep.mubr.f32.mxu0 %v967_v0  ;;  %v305_v20 = vand.u32 4294901760, %v304_v17  ;;  %v311_v21 = vand.u32 4294901760, %v310_v18 }
  0x25   : > { %v294_v19 = vand.u32 4294901760, %v293_v16  ;;  %615 = vmatprep.subr.mxu0 %v223_v7 }
  0x26   : > { %306 = vmatprep.subr.mxu1 %v305_v20 }
  0x27   : > { %295 = vmatmul.mubr.f32.vlgmr.msra.gmra.mrb[0].mxu1 %v294_v19 }
  0x28   : > { %312 = vmatpush1.msra.mxu1 %v311_v21  ;;  %375 = vmatprep.mubr.f32.mxu1 %v967_v0 }
  0x29   : > { %385 = vmatprep.subr.mxu1 %v302_v12 }
  0x2b   : > { %608 = vmatmul.mubr.f32.vlgmr.msra.gmra.mrb[0].mxu0 %v290_v9 }
  0x2c   : > { %617 = vmatpush1.msra.mxu0 %v225_v8  ;;  %680 = vmatprep.mubr.f32.mxu0 %v967_v0 }
  0x2f   : > { %377 = vmatmul.mubr.f32.vlgmr.msra.gmra.mrb[0].mxu1 %v290_v9 }
  0x30   : > { %388 = vmatpush1.msra.mxu1 %v308_v10  ;;  %451 = vmatprep.mubr.f32.mxu1 %v967_v0 }
  0x33   : > { %682 = vmatmul.mubr.f32.vlgmr.msra.gmra.mrb[0].mxu0 %v290_v9 }
  0x37   : > { %454 = vmatmul.mubr.f32.vlgmr.msra.gmra.mrb[0].mxu1 %v291_v11 }
 0x106   : > { %v683_v22 = vpop.f32.mrb[0].mxu0 }
 0x107   : > { %v685_v23 = vpop.f32.mrb[1].mxu0 }
 0x10a   : > { %v455_v24 = vpop.f32.mrb[0].mxu1 }
 0x10b   : > { %v817_v25 = vadd.f32 %v683_v22, %v455_v24  ;;  %v457_v26 = vpop.f32.mrb[1].mxu1 }
 0x10c   : > { %v818_v27 = vadd.f32 %v685_v23, %v457_v26 }
 0x10d   : > { %v688_v28 = vmul.f32 1.442695, %v817_v25 }
 0x10e   : > { %v690_v29 = vmul.f32 1.442695, %v818_v27 }
 0x10f   : > { %883 = vpow2.f32 %v688_v28 }
 0x110   : > { %885 = vpow2.f32 %v690_v29 }
 0x119   : > { %v884_v30 = vpop.eup %883 }
 0x11a   : > { %v886_v31 = vpop.eup %885 }
 0x11b   : > { %v692_v32 = vadd.f32 %v886_v31, %v884_v30 }
 0x11d   : > { %693 = vst [vmem:[%s191_s7] sm:$0xff] %v692_v32 }
 0x11e   : > { %900 = shalt.err (!%p897_p5)
}
 0x11f   : > { %s901_s26 = scalar_lea.hbm %s1052_s18, 128  ;;  %s905_s29 = scalar_lea.hbm %s1101_s2, 512 }
 0x120   : > { %p902_p6 = scmp.ne.s32.totalorder %s1052_s18, %s901_s26  ;;  %p906_p10 = scmp.lt.u32.totalorder %s1052_s18, %s1101_s2 }
 0x121   : > { %p907_p11 = scmp.lt.u32.totalorder %s905_s29, %s901_s26  ;;  %p909_p13 = scmp.lt.u32.totalorder %s901_s26, %s1052_s18 }
 0x122   : > { %p903_p7 = pnand %p902_p6, %p1024_p4 }
 0x123   : > { %p908_p12 = por %p907_p11, %p906_p10 }
 0x124   : > { %p904_p9 = pneg %p903_p7 }
 0x125   : > { %p910_p0 = por %p909_p13, %p908_p12 }
 0x127   : > { %p911_p1 = pnand %p910_p0, %p904_p9 }
 0x129   : > { %914 = shalt.err (!%p911_p1)
}
 0x12a   : > { %827 = dma.vmem_to_hbm [thread:$0]  (%p1024_p4), %s1054_s8, 128, %s1052_s18, %s695_s20  }
 0x12b PF: > { %p833_p2 = scmp.ge.s32.totalorder %s965_s14, 2  ;;  %s722_s4 = sand.u32 1, %s945_s9  }
 0x12c   : > { %s723_s5 = scalar_lea.sflag [#allocation3], %s722_s4 }
 0x12d   : > { %p830_p3 = pnand %p833_p2, %p1031_p8 }
 0x12f   : > { %940 = dma.done.wait (!%p830_p3), %s723_s5, 128  }
 0x130   : > { %942 = vsyncadd (!%p830_p3), %s723_s5, 4294967168  ;;  %s15_s14 = sadd.s32 1, %s965_s14   ;;  %s1104_s9 = smov %s949_s10 }
 0x131   : > { %p12_p5 = scmp.ge.s32.totalorder %s15_s14, 6   ;;  %s1105_s10 = smov %s953_s11 }
 0x132   : > { %s1106_s11 = smov %s1037_s22  ;;  %s1107_s12 = smov %s961_s13 }
 0x133   : > { %s1108_s13 = smov %s1110_s17  ;;  %14 = sbr.rel (!%p12_p5) target bundleno = 4 (0x4), region = 66 }
 0x13a   :  { %728 = vsyncpa [#allocation3], 1 }
 0x13b   :  { %730 = vsyncpa [#allocation3 + $0x1], 1 }

</bundles_post_ra>
